<compile_context>
chip_gen: v7x
topology: tpu7x:2x2x1
jax: 0.10.0
libtpu: 0.0.40
codegen_flags: <defaults>
</compile_context>

<pallas_src>
import functools

import jax
import jax.numpy as jnp
from jax.experimental import pallas as pl
from jax.experimental.pallas import tpu as pltpu


def _round_up(v, m):
    return ((v + m - 1) // m) * m


# ---------------------------------------------------------------------------
# Fused kernel: whole DDCNet forward, single invocation (no grid).
# ---------------------------------------------------------------------------
def _fused_kernel(x_ref, astk_ref, w_ref, b_ref, lw_ref, lb_ref, o_ref,
                  *, num_hidden, K, BN):
    """Shapes (BN = padded batch*node rows, DP = padded feature width):
      x_ref   : (BN, DP)              node features, batch folded into rows (compute dtype)
      astk_ref: ((K-1)*BN, BN)        row-stacked block-diag [A^1; ...; A^{K-1}]
      w_ref   : (num_hidden*K, DP, DP) packed per-(layer,hop) weights (zero-padded)
      b_ref   : (num_hidden, 1, DP)   f32 per-layer biases (zero-padded)
      lw_ref  : (DP, Dout)            final linear weight
      lb_ref  : (1, Dout)             f32 final linear bias
      o_ref   : (BN, Dout)            f32 output
    """
    cdt = x_ref.dtype                          # compute dtype (bf16 fast path / f32)
    astk = astk_ref[...]                       # loaded once, reused every layer
    h = x_ref[...]                             # (BN, DP)

    for l in range(num_hidden):                # static -> fully unrolled
        # All diffusion hops in a single MXU matmul: rows = [A^1 h; ...; A^{K-1} h].
        hd = jnp.dot(astk, h, preferred_element_type=jnp.float32).astype(cdt)

        # k = 0 hop (identity) + higher hops via static, sublane-aligned row slices.
        acc = jnp.dot(h, w_ref[l * K], preferred_element_type=jnp.float32)
        for k in range(1, K):
            acc = acc + jnp.dot(hd[(k - 1) * BN:k * BN, :], w_ref[l * K + k],
                                preferred_element_type=jnp.float32)

        # Bias + ReLU in f32 (v5e has no bf16 VALU); cast only at matmul inputs.
        h = jnp.maximum(acc + b_ref[l], 0.0).astype(cdt)

    # Final nn.Linear.
    y = jnp.dot(h, lw_ref[...], preferred_element_type=jnp.float32) + lb_ref[...]
    # TODO(synk): if N/dim_out grow, present the output as a lane-dense (>=128 wide)
    # slab; at (80, 8) the masked stores are negligible.
    o_ref[...] = y.astype(o_ref.dtype)


# ---------------------------------------------------------------------------
# One-time preprocessing (hoisted out of the per-call path)
# ---------------------------------------------------------------------------
def build_diffusion_operator(A, *, K, batch, bn_pad, compute_dtype=jnp.bfloat16):
    """Row-stacked [blockdiag_B(A^1); ...; blockdiag_B(A^{K-1})], each block padded
    to (bn_pad, bn_pad). Power chain is computed in f32; cast at the very end."""
    N = A.shape[0]
    A32 = A.astype(jnp.float32)
    eye_b = jnp.eye(batch, dtype=jnp.float32)
    blocks = []
    Ak = A32
    for _ in range(1, K):
        blk = jnp.kron(eye_b, Ak)                              # (B*N, B*N)
        pad = bn_pad - batch * N
        blk = jnp.pad(blk, ((0, pad), (0, pad)))               # (bn_pad, bn_pad)
        blocks.append(blk)
        Ak = Ak @ A32
    return jnp.concatenate(blocks, axis=0).astype(compute_dtype)


def pack_params(params, *, K, compute_dtype=jnp.bfloat16):
    """Pack all layer weights/biases into single padded arrays (fewer DMAs)."""
    Ws = [W for (W, _) in params["layers"]]
    bs = [b for (_, b) in params["layers"]]
    dim_hidden = Ws[0].shape[-1]
    dim_in = Ws[0].shape[1]
    DP = _round_up(max(dim_in, dim_hidden), 16)     # 16-aligned for bf16 packing

    w_blocks = []
    for W in Ws:                                     # (K, Din_l, Dh)
        Wp = jnp.pad(W, ((0, 0),
                         (0, DP - W.shape[1]),
                         (0, DP - W.shape[2])))
        w_blocks.append(Wp)
    w_all = jnp.concatenate(w_blocks, axis=0).astype(compute_dtype)   # (L*K, DP, DP)

    b_all = jnp.stack(
        [jnp.pad(b.reshape(1, -1), ((0, 0), (0, DP - b.shape[-1]))) for b in bs],
        axis=0).astype(jnp.float32)                                   # (L, 1, DP)

    lin_W = params["lin_W"]                          # (Dh, Dout), already transposed
    lw = jnp.pad(lin_W, ((0, DP - lin_W.shape[0]), (0, 0))).astype(compute_dtype)
    lb = params["lin_b"].reshape(1, -1).astype(jnp.float32)

    return {"w_all": w_all, "b_all": b_all, "lin_W": lw, "lin_b": lb}


# ---------------------------------------------------------------------------
# Forward wrapper: one pallas_call, everything resident in VMEM
# ---------------------------------------------------------------------------
def ddcnet_forward(packed, x, astk, *, K):
    B, N, dim_in = x.shape
    w_all = packed["w_all"]
    DP = w_all.shape[-1]
    num_hidden = w_all.shape[0] // K
    dim_out = packed["lin_W"].shape[-1]
    BN = astk.shape[-1]
    cdt = w_all.dtype

    # Fold batch into the row (sublane) axis; zero-pad rows and feature lanes.
    x_flat = x.reshape(B * N, dim_in)
    x_pad = jnp.pad(x_flat, ((0, BN - B * N), (0, DP - dim_in))).astype(cdt)

    kernel = functools.partial(_fused_kernel, num_hidden=num_hidden, K=K, BN=BN)
    vmem = lambda: pl.BlockSpec(memory_space=pltpu.MemorySpace.VMEM)

    out_pad = pl.pallas_call(
        kernel,
        out_shape=jax.ShapeDtypeStruct((BN, dim_out), jnp.float32),
        in_specs=[vmem() for _ in range(6)],
        out_specs=vmem(),
    )(x_pad, astk, w_all, packed["b_all"], packed["lin_W"], packed["lin_b"])

    return out_pad[:B * N].reshape(B, N, dim_out)


# ---------------------------------------------------------------------------
# Parameters (match the PyTorch module layout)
# ---------------------------------------------------------------------------
def init_ddcnet_params(key, dim_in, dim_hidden, num_hidden, dim_out, K):
    params = {"layers": []}
    for l in range(num_hidden):
        din = dim_in if l == 0 else dim_hidden
        key, kw, kb = jax.random.split(key, 3)
        W = 0.1 * jax.random.normal(kw, (K, din, dim_hidden), jnp.float32)
        b = 0.1 * jax.random.normal(kb, (1, dim_hidden), jnp.float32)
        params["layers"].append((W, b))
    key, kw, kb, kh = jax.random.split(key, 4)
    # torch Linear weight is (dim_out, dim_hidden); store transposed for x @ W.
    params["lin_W"] = 0.1 * jax.random.normal(kw, (dim_hidden, dim_out), jnp.float32)
    params["lin_b"] = 0.1 * jax.random.normal(kb, (1, dim_out), jnp.float32)
    # h0 exists in the PyTorch module but is only used by initiation(), not forward().
    params["h0"] = 0.01 * jax.random.normal(kh, (1, dim_out), jnp.float32)
    return params


# ---------------------------------------------------------------------------
# Pure-JAX f32 reference (serial A@(A@x) recurrence, exactly the torch semantics)
# ---------------------------------------------------------------------------
def ref_forward(params, x, A, *, K):
    dh = x
    for (W, b) in params["layers"]:
        acc = jnp.einsum("bnd,do->bno", dh, W[0])
        xk = dh
        for k in range(1, K):
            xk = jnp.einsum("nm,bmd->bnd", A, xk)
            acc = acc + jnp.einsum("bnd,do->bno", xk, W[k])
        dh = jnp.maximum(acc + b, 0.0)
    return jnp.einsum("bnd,do->bno", dh, params["lin_W"]) + params["lin_b"]


# ---------------------------------------------------------------------------
# Main
# ---------------------------------------------------------------------------
if __name__ == "__main__":
    # Small, module-consistent shapes (numNode=33 is the module default).
    B, N = 2, 33
    dim_in, dim_hidden, num_hidden, dim_out, K = 4, 32, 2, 8, 3

    key = jax.random.PRNGKey(0)
    key, kx, ka = jax.random.split(key, 3)
    x = jax.random.normal(kx, (B, N, dim_in), jnp.float32)
    # Row-normalized random adjacency (diffusion matrix).
    A_raw = jax.random.uniform(ka, (N, N), jnp.float32)
    A = A_raw / jnp.sum(A_raw, axis=-1, keepdims=True)

    params = init_ddcnet_params(key, dim_in, dim_hidden, num_hidden, dim_out, K)

    BN = _round_up(B * N, 16)                 # 66 -> 80 rows (bf16 sublane aligned)
    fwd = jax.jit(functools.partial(ddcnet_forward, K=K))
    ref = ref_forward(params, x, A, K=K)

    # 1) Exact-semantics check with f32 operands (tight tolerance).
    packed_f32 = pack_params(params, K=K, compute_dtype=jnp.float32)
    astk_f32 = build_diffusion_operator(A, K=K, batch=B, bn_pad=BN,
                                        compute_dtype=jnp.float32)
    out_f32 = jax.block_until_ready(fwd(packed_f32, x, astk_f32))
    assert out_f32.shape == (B, N, dim_out), out_f32.shape
    assert jnp.allclose(out_f32, ref, atol=1e-4, rtol=1e-4), \
        float(jnp.max(jnp.abs(out_f32 - ref)))

    # 2) Fast path: bf16 matmul operands, f32 accumulation (looser tolerance).
    packed_bf16 = pack_params(params, K=K, compute_dtype=jnp.bfloat16)
    astk_bf16 = build_diffusion_operator(A, K=K, batch=B, bn_pad=BN,
                                         compute_dtype=jnp.bfloat16)
    out_bf16 = jax.block_until_ready(fwd(packed_bf16, x, astk_bf16))
    assert out_bf16.shape == (B, N, dim_out), out_bf16.shape
    assert jnp.allclose(out_bf16, ref, atol=5e-2, rtol=5e-2), \
        float(jnp.max(jnp.abs(out_bf16 - ref)))

    print("KERNEL_OK")
</pallas_src>

<mosaic_0001>
module attributes {stable_mosaic.version = 11 : i64} {
  func.func @_fused_kernel(%arg0: memref<80x32xf32, #tpu.memory_space<vmem>>, %arg1: memref<160x80xf32, #tpu.memory_space<vmem>>, %arg2: memref<6x32x32xf32, #tpu.memory_space<vmem>>, %arg3: memref<2x1x32xf32, #tpu.memory_space<vmem>>, %arg4: memref<32x8xf32, #tpu.memory_space<vmem>>, %arg5: memref<1x8xf32, #tpu.memory_space<vmem>>, %arg6: memref<80x8xf32, #tpu.memory_space<vmem>>) attributes {dimension_semantics = [], scalar_prefetch = 0 : i64, scratch_operands = 0 : i64, tpu.core_type = #tpu.core_type<tc>} {
    %c0 = arith.constant 0 : index
    %c0_0 = arith.constant 0 : index
    %0 = vector.load %arg1[%c0, %c0_0] : memref<160x80xf32, #tpu.memory_space<vmem>>, vector<160x80xf32>
    %c0_1 = arith.constant 0 : index
    %c0_2 = arith.constant 0 : index
    %1 = vector.load %arg0[%c0_1, %c0_2] : memref<80x32xf32, #tpu.memory_space<vmem>>, vector<80x32xf32>
    %cst = arith.constant dense<0.000000e+00> : vector<160x32xf32>
    %2 = tpu.matmul %0, %1, %cst {dimension_numbers = #tpu.dot_dimension_numbers<[1], [0], [0], [1], [0, 0, 1, 1], [], []>} : vector<160x80xf32>, vector<80x32xf32>, vector<160x32xf32> -> vector<160x32xf32>
    %c0_3 = arith.constant 0 : index
    %c0_4 = arith.constant 0 : index
    %c0_5 = arith.constant 0 : index
    %3 = vector.load %arg2[%c0_3, %c0_4, %c0_5] : memref<6x32x32xf32, #tpu.memory_space<vmem>>, vector<1x32x32xf32>
    %4 = vector.shape_cast %3 : vector<1x32x32xf32> to vector<32x32xf32>
    %cst_6 = arith.constant dense<0.000000e+00> : vector<80x32xf32>
    %5 = tpu.matmul %1, %4, %cst_6 {dimension_numbers = #tpu.dot_dimension_numbers<[1], [0], [0], [1], [0, 0, 1, 1], [], []>} : vector<80x32xf32>, vector<32x32xf32>, vector<80x32xf32> -> vector<80x32xf32>
    %6 = vector.extract_strided_slice %2 {offsets = [0, 0], sizes = [80, 32], strides = [1, 1]} : vector<160x32xf32> to vector<80x32xf32>
    %c1 = arith.constant 1 : index
    %c0_7 = arith.constant 0 : index
    %c0_8 = arith.constant 0 : index
    %7 = vector.load %arg2[%c1, %c0_7, %c0_8] : memref<6x32x32xf32, #tpu.memory_space<vmem>>, vector<1x32x32xf32>
    %8 = vector.shape_cast %7 : vector<1x32x32xf32> to vector<32x32xf32>
    %cst_9 = arith.constant dense<0.000000e+00> : vector<80x32xf32>
    %9 = tpu.matmul %6, %8, %cst_9 {dimension_numbers = #tpu.dot_dimension_numbers<[1], [0], [0], [1], [0, 0, 1, 1], [], []>} : vector<80x32xf32>, vector<32x32xf32>, vector<80x32xf32> -> vector<80x32xf32>
    %10 = arith.addf %5, %9 : vector<80x32xf32>
    %11 = vector.extract_strided_slice %2 {offsets = [80, 0], sizes = [80, 32], strides = [1, 1]} : vector<160x32xf32> to vector<80x32xf32>
    %c2 = arith.constant 2 : index
    %c0_10 = arith.constant 0 : index
    %c0_11 = arith.constant 0 : index
    %12 = vector.load %arg2[%c2, %c0_10, %c0_11] : memref<6x32x32xf32, #tpu.memory_space<vmem>>, vector<1x32x32xf32>
    %13 = vector.shape_cast %12 : vector<1x32x32xf32> to vector<32x32xf32>
    %cst_12 = arith.constant dense<0.000000e+00> : vector<80x32xf32>
    %14 = tpu.matmul %11, %13, %cst_12 {dimension_numbers = #tpu.dot_dimension_numbers<[1], [0], [0], [1], [0, 0, 1, 1], [], []>} : vector<80x32xf32>, vector<32x32xf32>, vector<80x32xf32> -> vector<80x32xf32>
    %15 = arith.addf %10, %14 : vector<80x32xf32>
    %c0_13 = arith.constant 0 : index
    %c0_14 = arith.constant 0 : index
    %c0_15 = arith.constant 0 : index
    %16 = vector.load %arg3[%c0_13, %c0_14, %c0_15] : memref<2x1x32xf32, #tpu.memory_space<vmem>>, vector<1x1x32xf32>
    %17 = vector.shape_cast %16 : vector<1x1x32xf32> to vector<1x32xf32>
    %18 = vector.broadcast %17 : vector<1x32xf32> to vector<80x32xf32>
    %19 = arith.addf %15, %18 : vector<80x32xf32>
    %cst_16 = arith.constant 0.000000e+00 : f32
    %20 = vector.broadcast %cst_16 : f32 to vector<80x32xf32>
    %21 = arith.maximumf %19, %20 : vector<80x32xf32>
    %cst_17 = arith.constant dense<0.000000e+00> : vector<160x32xf32>
    %22 = tpu.matmul %0, %21, %cst_17 {dimension_numbers = #tpu.dot_dimension_numbers<[1], [0], [0], [1], [0, 0, 1, 1], [], []>} : vector<160x80xf32>, vector<80x32xf32>, vector<160x32xf32> -> vector<160x32xf32>
    %c3 = arith.constant 3 : index
    %c0_18 = arith.constant 0 : index
    %c0_19 = arith.constant 0 : index
    %23 = vector.load %arg2[%c3, %c0_18, %c0_19] : memref<6x32x32xf32, #tpu.memory_space<vmem>>, vector<1x32x32xf32>
    %24 = vector.shape_cast %23 : vector<1x32x32xf32> to vector<32x32xf32>
    %cst_20 = arith.constant dense<0.000000e+00> : vector<80x32xf32>
    %25 = tpu.matmul %21, %24, %cst_20 {dimension_numbers = #tpu.dot_dimension_numbers<[1], [0], [0], [1], [0, 0, 1, 1], [], []>} : vector<80x32xf32>, vector<32x32xf32>, vector<80x32xf32> -> vector<80x32xf32>
    %26 = vector.extract_strided_slice %22 {offsets = [0, 0], sizes = [80, 32], strides = [1, 1]} : vector<160x32xf32> to vector<80x32xf32>
    %c4 = arith.constant 4 : index
    %c0_21 = arith.constant 0 : index
    %c0_22 = arith.constant 0 : index
    %27 = vector.load %arg2[%c4, %c0_21, %c0_22] : memref<6x32x32xf32, #tpu.memory_space<vmem>>, vector<1x32x32xf32>
    %28 = vector.shape_cast %27 : vector<1x32x32xf32> to vector<32x32xf32>
    %cst_23 = arith.constant dense<0.000000e+00> : vector<80x32xf32>
    %29 = tpu.matmul %26, %28, %cst_23 {dimension_numbers = #tpu.dot_dimension_numbers<[1], [0], [0], [1], [0, 0, 1, 1], [], []>} : vector<80x32xf32>, vector<32x32xf32>, vector<80x32xf32> -> vector<80x32xf32>
    %30 = arith.addf %25, %29 : vector<80x32xf32>
    %31 = vector.extract_strided_slice %22 {offsets = [80, 0], sizes = [80, 32], strides = [1, 1]} : vector<160x32xf32> to vector<80x32xf32>
    %c5 = arith.constant 5 : index
    %c0_24 = arith.constant 0 : index
    %c0_25 = arith.constant 0 : index
    %32 = vector.load %arg2[%c5, %c0_24, %c0_25] : memref<6x32x32xf32, #tpu.memory_space<vmem>>, vector<1x32x32xf32>
    %33 = vector.shape_cast %32 : vector<1x32x32xf32> to vector<32x32xf32>
    %cst_26 = arith.constant dense<0.000000e+00> : vector<80x32xf32>
    %34 = tpu.matmul %31, %33, %cst_26 {dimension_numbers = #tpu.dot_dimension_numbers<[1], [0], [0], [1], [0, 0, 1, 1], [], []>} : vector<80x32xf32>, vector<32x32xf32>, vector<80x32xf32> -> vector<80x32xf32>
    %35 = arith.addf %30, %34 : vector<80x32xf32>
    %c1_27 = arith.constant 1 : index
    %c0_28 = arith.constant 0 : index
    %c0_29 = arith.constant 0 : index
    %36 = vector.load %arg3[%c1_27, %c0_28, %c0_29] : memref<2x1x32xf32, #tpu.memory_space<vmem>>, vector<1x1x32xf32>
    %37 = vector.shape_cast %36 : vector<1x1x32xf32> to vector<1x32xf32>
    %38 = vector.broadcast %37 : vector<1x32xf32> to vector<80x32xf32>
    %39 = arith.addf %35, %38 : vector<80x32xf32>
    %cst_30 = arith.constant 0.000000e+00 : f32
    %40 = vector.broadcast %cst_30 : f32 to vector<80x32xf32>
    %41 = arith.maximumf %39, %40 : vector<80x32xf32>
    %c0_31 = arith.constant 0 : index
    %c0_32 = arith.constant 0 : index
    %42 = vector.load %arg4[%c0_31, %c0_32] : memref<32x8xf32, #tpu.memory_space<vmem>>, vector<32x8xf32>
    %cst_33 = arith.constant dense<0.000000e+00> : vector<80x8xf32>
    %43 = tpu.matmul %41, %42, %cst_33 {dimension_numbers = #tpu.dot_dimension_numbers<[1], [0], [0], [1], [0, 0, 1, 1], [], []>} : vector<80x32xf32>, vector<32x8xf32>, vector<80x8xf32> -> vector<80x8xf32>
    %c0_34 = arith.constant 0 : index
    %c0_35 = arith.constant 0 : index
    %44 = vector.load %arg5[%c0_34, %c0_35] : memref<1x8xf32, #tpu.memory_space<vmem>>, vector<1x8xf32>
    %45 = vector.broadcast %44 : vector<1x8xf32> to vector<80x8xf32>
    %46 = arith.addf %43, %45 : vector<80x8xf32>
    %c0_36 = arith.constant 0 : index
    %c0_37 = arith.constant 0 : index
    %47 = vector.load %arg6[%c0_36, %c0_37] : memref<80x8xf32, #tpu.memory_space<vmem>>, vector<80x8xf32>
    tpu.vector_store %arg6[%c0_36, %c0_37], %46 {strides = array<i32>} : memref<80x8xf32, #tpu.memory_space<vmem>>, vector<80x8xf32>,
    return
  }
}

</mosaic_0001>

<bundles_post_ra>
// kernel: ddcnet_forward.1
= control target key start
LH: loop header
LB: loop body
LE: loop exit
PB: predicated region body
PF: predicated region fallthrough
CT: control target
= control target key end

     0   :  { %11 = vsyncpa [#allocation3], 0  ;;  %s2321_s21 = smov [#allocation2]   ;;  %s2834_s0 = inlined_call_operand.vmem [shape: f32[80,32], index: 0, kind: input, shape index: {}]   ;;  %s2835_s1 = inlined_call_operand.hbm [shape: f32[160,80], index: 1, kind: input, shape index: {}]   ;;  %s2836_s2 = inlined_call_operand.vmem [shape: f32[6,32,32], index: 2, kind: input, shape index: {}]   ;;  %s2837_s3 = inlined_call_operand.vmem [shape: f32[2,1,32], index: 3, kind: input, shape index: {}]   ;;  %s2838_s4 = inlined_call_operand.vmem [shape: f32[32,8], index: 4, kind: input, shape index: {}]   ;;  %s2839_s5 = inlined_call_operand.vmem [shape: f32[1,8], index: 5, kind: input, shape index: {}]   ;;  %s2840_s6 = inlined_call_operand.vmem [shape: f32[80,8], index: 6, kind: output, shape index: {}]  }
   0x1   :  { %s19_s22 = sshll.u32 %s2321_s21, 4  ;;  %s2297_s25 = scalar_lea.hbm %s2835_s1, 2560  ;;  %s20_s22 = int_to_ptr.vmem [resolvable:$true] %s19_s22 }
   0x2   :  { %p2298_p0 = scmp.ne.s32.totalorder %s2835_s1, %s2297_s25  ;;  %p2301_p1 = scmp.lt.u32.totalorder %s2297_s25, %s2835_s1 }
   0x4   :  { %p2303_p2 = pnand %p2301_p1, %p2298_p0 }
   0x6   :  { %2306 = shalt.err (!%p2303_p2)
}
   0x7   :  { %s2307_s30 = scalar_lea.vmem %s20_s22, 2560  ;;  %p2312_p4 = scmp.lt.s32.totalorder %s20_s22, %s20_s22 }
   0x8   :  { %p2308_p3 = scmp.ne.s32.totalorder %s20_s22, %s2307_s30  ;;  %p2313_p5 = scmp.lt.s32.totalorder %s2307_s30, %s2307_s30 }
   0xa   :  { %p2314_p6 = por %p2313_p5, %p2312_p4 }
   0xc   :  { %p2315_p7 = pnand %p2314_p6, %p2308_p3 }
   0xe   :  { %2318 = shalt.err (!%p2315_p7)
}
   0xf   :  { %s2322_s7 = smov 128   ;;  %s2323_s8 = smov 8  }
  0x10   :  { %25 = dma.hbm_to_vmem [thread:$0]  %s2835_s1, 2560, %s20_s22, [#allocation3], %s2322_s7, %s2322_s7, %s2323_s8  }
  0x11   :  { %2319 = dma.done.wait [#allocation3], 2560  }
  0x12   :  { %2320 = vsyncadd [#allocation3], 4294964736  ;;  %v2374_v0 = vld [vmem:[%s2834_s0] sm:$0xff]  ;;  %v2379_v1 = vld [vmem:[%s2834_s0 + $0x8] sm:$0xff]  ;;  %vm67_vm0 = vcmask 654336   ;;  %vm302_vm1 = vcmask 261120  }
  0x13   :  { %v2384_v2 = vld [vmem:[%s2834_s0 + $0x10] sm:$0xff]  ;;  %v2158_v3 = vpack.c.bf16 %v2379_v1, %v2374_v0  ;;  %v2391_v4 = vld [vmem:[%s2834_s0 + $0x18] sm:$0xff]  ;;  %v2398_v6 = vld [vmem:[%s2834_s0 + $0x20] sm:$0xff]  ;;  %vm1589_vm2 = vcmask 64512  }
  0x14   :  { %v2162_v5 = vpack.c.bf16 %v2391_v4, %v2384_v2  ;;  %v2403_v7 = vld [vmem:[%s2834_s0 + $0x28] sm:$0xff]  ;;  %v2405_v8 = vld [vmem:[#allocation2] sm:$0xff]  ;;  %v2414_v10 = vld [vmem:[%s2834_s0 + $0x30] sm:$0xff] }
  0x15   :  { %2159 = vmatprep.subr.bf16.mxu0 %v2158_v3  ;;  %1917 = vmatprep.mubr.msk.f32.mxu0 %vm67_vm0, %v2405_v8  ;;  %v2166_v9 = vpack.c.bf16 %v2403_v7, %v2398_v6  ;;  %v2419_v11 = vld [vmem:[%s2834_s0 + $0x38] sm:$0xff]  ;;  %v2426_v13 = vld [vmem:[%s2834_s0 + $0x40] sm:$0xff]  ;;  %v2431_v14 = vld [vmem:[%s2834_s0 + $0x48] sm:$0xff] }
  0x16   :  { %2161 = vmatpush3.bf16.msra.mxu0 %v2158_v3  ;;  %v2170_v12 = vpack.c.bf16 %v2419_v11, %v2414_v10  ;;  %v1625_v15 = vld [vmem:[%s2836_s2 + $0x20] sm:$0xff]  ;;  %v1626_v16 = vld [vmem:[%s2836_s2 + $0x28] sm:$0xff]  ;;  %v1627_v17 = vld [vmem:[%s2836_s2 + $0x30] sm:$0xff]  ;;  %v2174_v21 = vpack.c.bf16 %v2431_v14, %v2426_v13 }
  0x17   :  { %2163 = vmatprep.subr.bf16.mxu0 %v2162_v5  ;;  %v2178_v18 = vpack.c.bf16 %v1626_v16, %v1625_v15  ;;  %v1628_v19 = vld [vmem:[%s2836_s2 + $0x38] sm:$0xff]  ;;  %v2447_v22 = vld [vmem:[#allocation2 + $0x8] sm:$0xff]  ;;  %v2449_v23 = vld [vmem:[#allocation2 + $0x10] sm:$0xff] }
  0x18   :  { %v2182_v20 = vpack.c.bf16 %v1628_v19, %v1627_v17  ;;  %v2455_v24 = vld [vmem:[#allocation2 + $0x18] sm:$0xff]  ;;  %v2457_v25 = vld [vmem:[#allocation2 + $0x20] sm:$0xff]  ;;  %v2463_v26 = vld [vmem:[#allocation2 + $0x28] sm:$0xff] }
  0x19   :  { %2179 = vmatprep.subr.bf16.mxu1 %v2178_v18  ;;  %v2465_v27 = vld [vmem:[#allocation2 + $0x30] sm:$0xff]  ;;  %v2471_v28 = vld [vmem:[#allocation2 + $0x38] sm:$0xff]  ;;  %v2473_v29 = vld [vmem:[#allocation2 + $0x40] sm:$0xff] }
  0x1a   :  { %2165 = vmatpush3.bf16.msra.mxu0 %v2162_v5  ;;  %2181 = vmatpush3.bf16.msra.mxu1 %v2178_v18  ;;  %v2479_v30 = vld [vmem:[#allocation2 + $0x48] sm:$0xff]  ;;  %v2481_v31 = vld [vmem:[#allocation2 + $0x50] sm:$0xff]  ;;  %v2487_v32 = vld [vmem:[#allocation2 + $0x58] sm:$0xff] }
  0x1b   :  { %2167 = vmatprep.subr.bf16.mxu0 %v2166_v9  ;;  %2183 = vmatprep.subr.bf16.mxu1 %v2182_v20  ;;  %v2489_v33 = vld [vmem:[#allocation2 + $0x60] sm:$0xff]  ;;  %v2495_v34 = vld [vmem:[#allocation2 + $0x68] sm:$0xff]  ;;  %v2497_v35 = vld [vmem:[#allocation2 + $0x70] sm:$0xff] }
  0x1c   :  { %v2503_v36 = vld [vmem:[#allocation2 + $0x78] sm:$0xff]  ;;  %v2505_v37 = vld [vmem:[#allocation2 + $0x80] sm:$0xff]  ;;  %v2511_v38 = vld [vmem:[#allocation2 + $0x88] sm:$0xff] }
  0x1d   :  { %v2513_v39 = vld [vmem:[#allocation2 + $0x90] sm:$0xff]  ;;  %v2519_v40 = vld [vmem:[#allocation2 + $0x98] sm:$0xff]  ;;  %v293_v41 = vld [vmem:[%s2836_s2] sm:$0xff] }
  0x1e   :  { %2169 = vmatpush3.bf16.msra.mxu0 %v2166_v9  ;;  %2185 = vmatpush3.bf16.msra.mxu1 %v2182_v20  ;;  %v294_v42 = vld [vmem:[%s2836_s2 + $0x8] sm:$0xff]  ;;  %v295_v44 = vld [vmem:[%s2836_s2 + $0x10] sm:$0xff]  ;;  %v296_v45 = vld [vmem:[%s2836_s2 + $0x18] sm:$0xff] }
  0x1f   :  { %2171 = vmatprep.subr.bf16.mxu0 %v2170_v12  ;;  %v2186_v43 = vpack.c.bf16 %v294_v42, %v293_v41  ;;  %v2190_v48 = vpack.c.bf16 %v296_v45, %v295_v44  ;;  %v1649_v49 = vld [vmem:[%s2836_s2 + $0x40] sm:$0xff]  ;;  %v1650_v50 = vld [vmem:[%s2836_s2 + $0x48] sm:$0xff]  ;;  %v1651_v60 = vld [vmem:[%s2836_s2 + $0x50] sm:$0xff] }
  0x20   :  { %v2194_v53 = vpack.c.bf16 %v1650_v50, %v1649_v49  ;;  %v1652_v61 = vld [vmem:[%s2836_s2 + $0x58] sm:$0xff]  ;;  %v1663_v15 = vld [vmem:[%s2837_s3] ss:$0 sm:$0xff] }
  0x21   :  { %2187 = vmatprep.subr.bf16.mxu1 %v2186_v43  ;;  %v2198_v63 = vpack.c.bf16 %v1652_v61, %v1651_v60 }
  0x22   :  { %2173 = vmatpush3.bf16.msra.mxu0 %v2170_v12 }
  0x23   :  { %2175 = vmatprep.subr.bf16.mxu0 %v2174_v21 }
  0x26   :  { %2177 = vmatpush3.bf16.msra.mxu0 %v2174_v21 }
  0x29   :  { %1918 = vmatmul.mubr.msk.f32.vlgmr.msra.gmra.mrb[0].mxu0 %vm67_vm0, %v2447_v22 }
  0x2a   :  { %1920 = vmatprep.mubr.msk.f32.mxu0 %vm67_vm0, %v2449_v23 }
  0x2d   :  { %1921 = vmatmul.mubr.msk.f32.gmra.mrb[2].mxu0 %vm67_vm0, %v2455_v24 }
  0x2e   :  { %1923 = vmatprep.mubr.msk.f32.mxu0 %vm67_vm0, %v2457_v25 }
  0x31   :  { %1924 = vmatmul.mubr.msk.f32.gmra.mrb[4].mxu0 %vm67_vm0, %v2463_v26 }
  0x32   :  { %1926 = vmatprep.mubr.msk.f32.mxu0 %vm67_vm0, %v2465_v27 }
  0x35   :  { %1927 = vmatmul.mubr.msk.f32.gmra.mrb[6].mxu0 %vm67_vm0, %v2471_v28 }
  0x36   :  { %1929 = vmatprep.mubr.msk.f32.mxu0 %vm67_vm0, %v2473_v29 }
  0x39   :  { %1930 = vmatmul.mubr.msk.f32.gmra.mrb[8].mxu0 %vm67_vm0, %v2479_v30 }
  0x3a   :  { %1932 = vmatprep.mubr.msk.f32.mxu0 %vm67_vm0, %v2481_v31 }
  0x3d   :  { %1933 = vmatmul.mubr.msk.f32.gmra.mrb[10].mxu0 %vm67_vm0, %v2487_v32 }
  0x3e   :  { %1935 = vmatprep.mubr.msk.f32.mxu0 %vm67_vm0, %v2489_v33 }
  0x41   :  { %1936 = vmatmul.mubr.msk.f32.gmra.mrb[12].mxu0 %vm67_vm0, %v2495_v34 }
  0x42   :  { %1938 = vmatprep.mubr.msk.f32.mxu0 %vm67_vm0, %v2497_v35 }
  0x45   :  { %1939 = vmatmul.mubr.msk.f32.gmra.mrb[14].mxu0 %vm67_vm0, %v2503_v36 }
  0x46   :  { %1941 = vmatprep.mubr.msk.f32.mxu0 %vm67_vm0, %v2505_v37 }
  0x49   :  { %1942 = vmatmul.mubr.msk.f32.gmra.mrb[16].mxu0 %vm67_vm0, %v2511_v38 }
  0x4a   :  { %1944 = vmatprep.mubr.msk.f32.mxu0 %vm67_vm0, %v2513_v39 }
  0x4d   :  { %1945 = vmatmul.mubr.msk.f32.gmra.mrb[18].mxu0 %vm67_vm0, %v2519_v40 }
  0x4e   :  { %2036 = vmatprep.mubr.msk.f32.mxu0 %vm67_vm0, %v2405_v8 }
  0xfc   :  { %v1919_v46 = vpop.f32.mrb[0].mxu0 }
  0xfd   :  { %v194_v47 = vpop.f32.mrb[1].mxu0 }
  0xfe   :  { %1955 = vmatprep.mubr.msk.f32.mxu1 %vm302_vm1, %v194_v47 }
  0xff   :  { %1956 = vmatmul.mubr.msk.f32.vlgmr.msra.gmra.mrb[0].mxu1 %vm302_vm1, %v1919_v46 }
 0x100   :  { %v1922_v51 = vpop.f32.mrb[2].mxu0  ;;  %2189 = vmatpush3.bf16.msra.mxu1 %v2186_v43 }
 0x101   :  { %v204_v52 = vpop.f32.mrb[3].mxu0  ;;  %2191 = vmatprep.subr.bf16.mxu1 %v2190_v48 }
 0x102   :  { %1958 = vmatprep.mubr.msk.f32.mxu1 %vm302_vm1, %v204_v52 }
 0x103   :  { %1959 = vmatmul.mubr.msk.f32.gmra.mrb[2].mxu1 %vm302_vm1, %v1922_v51 }
 0x104   :  { %v1925_v54 = vpop.f32.mrb[4].mxu0  ;;  %2193 = vmatpush3.bf16.msra.mxu1 %v2190_v48 }
 0x105   :  { %v214_v55 = vpop.f32.mrb[5].mxu0  ;;  %2195 = vmatprep.subr.bf16.mxu1 %v2194_v53 }
 0x106   :  { %1961 = vmatprep.mubr.msk.f32.mxu1 %vm302_vm1, %v214_v55 }
 0x107   :  { %1962 = vmatmul.mubr.msk.f32.gmra.mrb[4].mxu1 %vm302_vm1, %v1925_v54 }
 0x108   :  { %v1928_v56 = vpop.f32.mrb[6].mxu0 }
 0x109   :  { %v224_v57 = vpop.f32.mrb[7].mxu0 }
 0x10a   :  { %1964 = vmatprep.mubr.msk.f32.mxu1 %vm302_vm1, %v224_v57 }
 0x10b   :  { %1965 = vmatmul.mubr.msk.f32.gmra.mrb[6].mxu1 %vm302_vm1, %v1928_v56 }
 0x10c   :  { %v1931_v58 = vpop.f32.mrb[8].mxu0 }
 0x10d   :  { %v234_v59 = vpop.f32.mrb[9].mxu0 }
 0x10e   :  { %1967 = vmatprep.mubr.msk.f32.mxu1 %vm302_vm1, %v234_v59 }
 0x10f   :  { %1968 = vmatmul.mubr.msk.f32.gmra.mrb[8].mxu1 %vm302_vm1, %v1931_v58 }
 0x110   :  { %1978 = vmatprep.mubr.msk.f32.mxu1 %vm302_vm1, %v2374_v0  ;;  %v1934_v62 = vpop.f32.mrb[10].mxu0 }
 0x111   :  { %v244_v3 = vpop.f32.mrb[11].mxu0 }
 0x113   :  { %1979 = vmatmul.mubr.msk.f32.vlgmr.msra.gmra.mrb[0].mxu1 %vm302_vm1, %v2379_v1 }
 0x114   :  { %1981 = vmatprep.mubr.msk.f32.mxu1 %vm302_vm1, %v2384_v2  ;;  %2197 = vmatpush3.bf16.msra.mxu1 %v2194_v53  ;;  %v1937_v5 = vpop.f32.mrb[12].mxu0 }
 0x115   :  { %2199 = vmatprep.subr.bf16.mxu1 %v2198_v63  ;;  %v254_v8 = vpop.f32.mrb[13].mxu0 }
 0x117   :  { %1982 = vmatmul.mubr.msk.f32.gmra.mrb[2].mxu1 %vm302_vm1, %v2391_v4 }
 0x118   :  { %1984 = vmatprep.mubr.msk.f32.mxu1 %vm302_vm1, %v2398_v6  ;;  %2201 = vmatpush3.bf16.msra.mxu1 %v2198_v63  ;;  %v1940_v0 = vpop.f32.mrb[14].mxu0  ;;  %v1688_v6 = vld [vmem:[%s2836_s2 + $0x80] sm:$0xff] }
 0x119   :  { %v264_v9 = vpop.f32.mrb[15].mxu0 }
 0x11b   :  { %1985 = vmatmul.mubr.msk.f32.gmra.mrb[4].mxu1 %vm302_vm1, %v2403_v7  ;;  %v1689_v7 = vld [vmem:[%s2836_s2 + $0x88] sm:$0xff] }
 0x11c   :  { %1987 = vmatprep.mubr.msk.f32.mxu1 %vm302_vm1, %v2414_v10  ;;  %v1943_v1 = vpop.f32.mrb[16].mxu0  ;;  %v1690_v10 = vld [vmem:[%s2836_s2 + $0x90] sm:$0xff] }
 0x11d   :  { %v274_v2 = vpop.f32.mrb[17].mxu0 }
 0x11f   :  { %1988 = vmatmul.mubr.msk.f32.gmra.mrb[6].mxu1 %vm302_vm1, %v2419_v11  ;;  %v2222_v11 = vpack.c.bf16 %v1689_v7, %v1688_v6  ;;  %v1714_v6 = vld [vmem:[%s2836_s2 + $0xb0] sm:$0xff]  ;;  %v1715_v7 = vld [vmem:[%s2836_s2 + $0xb8] sm:$0xff] }
 0x120   :  { %1990 = vmatprep.mubr.msk.f32.mxu1 %vm302_vm1, %v2426_v13  ;;  %v1946_v4 = vpop.f32.mrb[18].mxu0  ;;  %v1691_v13 = vld [vmem:[%s2836_s2 + $0x98] sm:$0xff] }
 0x121   :  { %v284_v12 = vpop.f32.mrb[19].mxu0  ;;  %2223 = vmatprep.subr.bf16.mxu1 %v2222_v11 }
 0x123   :  { %1991 = vmatmul.mubr.msk.f32.gmra.mrb[8].mxu1 %vm302_vm1, %v2431_v14  ;;  %v2226_v14 = vpack.c.bf16 %v1691_v13, %v1690_v10 }
 0x124   :  { %2001 = vmatprep.mubr.msk.f32.mxu1 %vm302_vm1, %v244_v3 }
 0x127   :  { %2002 = vmatmul.mubr.msk.f32.vlgmr.msra.gmra.mrb[0].mxu1 %vm302_vm1, %v1934_v62 }
 0x128   :  { %2004 = vmatprep.mubr.msk.f32.mxu1 %vm302_vm1, %v254_v8  ;;  %2225 = vmatpush3.bf16.msra.mxu1 %v2222_v11  ;;  %v2242_v11 = vpack.c.bf16 %v1715_v7, %v1714_v6 }
 0x129   :  { %2227 = vmatprep.subr.bf16.mxu1 %v2226_v14 }
 0x12b   :  { %2005 = vmatmul.mubr.msk.f32.gmra.mrb[2].mxu1 %vm302_vm1, %v1937_v5 }
 0x12c   :  { %2007 = vmatprep.mubr.msk.f32.mxu1 %vm302_vm1, %v264_v9  ;;  %2229 = vmatpush3.bf16.msra.mxu1 %v2226_v14 }
 0x12f   :  { %2008 = vmatmul.mubr.msk.f32.gmra.mrb[4].mxu1 %vm302_vm1, %v1940_v0 }
 0x130   :  { %2010 = vmatprep.mubr.msk.f32.mxu1 %vm302_vm1, %v274_v2 }
 0x133   :  { %2011 = vmatmul.mubr.msk.f32.gmra.mrb[6].mxu1 %vm302_vm1, %v1943_v1 }
 0x134   :  { %2013 = vmatprep.mubr.msk.f32.mxu1 %vm302_vm1, %v284_v12 }
 0x137   :  { %2014 = vmatmul.mubr.msk.f32.gmra.mrb[8].mxu1 %vm302_vm1, %v1946_v4 }
 0x1fa   :  { %v2003_v16 = vpop.f32.mrb[0].mxu1 }
 0x1fb   :  { %v2604_v17 = vadd.f32 %v2003_v16, %v1663_v15  ;;  %v694_v18 = vpop.f32.mrb[1].mxu1 }
 0x1fc   :  { %v2606_v19 = vadd.f32 %v1663_v15, %v694_v18 }
 0x1fd   :  { %v771_v20 = vmax.f32 %v2604_v17, 0.0 }
 0x1fe   :  { %v770_v21 = vmax.f32 %v2606_v19, 0.0  ;;  %v2006_v41 = vpop.f32.mrb[2].mxu1 }
 0x1ff   :  { %v2610_v42 = vadd.f32 %v2006_v41, %v1663_v15  ;;  %v704_v43 = vpop.f32.mrb[3].mxu1  ;;  %v1435_v41 = vld [vmem:[%s2838_s4 + $0x10] sm:$0xff] }
 0x200   :  { %v2202_v44 = vpack.c.bf16 %v771_v20, %v770_v21  ;;  %v2616_v45 = vadd.f32 %v1663_v15, %v704_v43 }
 0x201   :  { %v773_v46 = vmax.f32 %v2610_v42, 0.0  ;;  %v1436_v42 = vld [vmem:[%s2838_s4 + $0x18] sm:$0xff] }
 0x202   :  { %v772_v47 = vmax.f32 %v2616_v45, 0.0  ;;  %v2009_v48 = vpop.f32.mrb[4].mxu1  ;;  %2203 = vmatprep.subr.bf16.mxu0 %v2202_v44  ;;  %v2250_v43 = vpack.c.bf16 %v1436_v42, %v1435_v41 }
 0x203   :  { %v2620_v49 = vadd.f32 %v2009_v48, %v1663_v15  ;;  %v714_v50 = vpop.f32.mrb[5].mxu1  ;;  %2205 = vmatpush3.bf16.msra.mxu0 %v2202_v44  ;;  %v1727_v44 = vld [vmem:[%s2837_s3 + $0x1] ss:$0 sm:$0xff] }
 0x204   :  { %v2206_v51 = vpack.c.bf16 %v773_v46, %v772_v47  ;;  %v2626_v52 = vadd.f32 %v1663_v15, %v714_v50 }
 0x205   :  { %v775_v53 = vmax.f32 %v2620_v49, 0.0 }
 0x206   :  { %v774_v54 = vmax.f32 %v2626_v52, 0.0  ;;  %v2012_v55 = vpop.f32.mrb[6].mxu1  ;;  %2207 = vmatprep.subr.bf16.mxu0 %v2206_v51 }
 0x207   :  { %v2630_v56 = vadd.f32 %v2012_v55, %v1663_v15  ;;  %v724_v57 = vpop.f32.mrb[7].mxu1  ;;  %2209 = vmatpush3.bf16.msra.mxu0 %v2206_v51 }
 0x208   :  { %v2210_v58 = vpack.c.bf16 %v775_v53, %v774_v54  ;;  %v2636_v59 = vadd.f32 %v1663_v15, %v724_v57 }
 0x209   :  { %v777_v60 = vmax.f32 %v2630_v56, 0.0 }
 0x20a   :  { %v776_v61 = vmax.f32 %v2636_v59, 0.0  ;;  %v2015_v62 = vpop.f32.mrb[8].mxu1  ;;  %2211 = vmatprep.subr.bf16.mxu0 %v2210_v58 }
 0x20b   :  { %v2640_v63 = vadd.f32 %v2015_v62, %v1663_v15  ;;  %v734_v3 = vpop.f32.mrb[9].mxu1  ;;  %2213 = vmatpush3.bf16.msra.mxu0 %v2210_v58 }
 0x20c   :  { %v2214_v5 = vpack.c.bf16 %v777_v60, %v776_v61  ;;  %v2646_v8 = vadd.f32 %v1663_v15, %v734_v3 }
 0x20d   :  { %v779_v0 = vmax.f32 %v2640_v63, 0.0 }
 0x20e   :  { %v778_v9 = vmax.f32 %v2646_v8, 0.0  ;;  %2215 = vmatprep.subr.bf16.mxu0 %v2214_v5 }
 0x20f   :  { %2217 = vmatpush3.bf16.msra.mxu0 %v2214_v5 }
 0x210   :  { %v2218_v1 = vpack.c.bf16 %v779_v0, %v778_v9 }
 0x212   :  { %2219 = vmatprep.subr.bf16.mxu0 %v2218_v1 }
 0x213   :  { %2221 = vmatpush3.bf16.msra.mxu0 %v2218_v1 }
 0x216   :  { %2037 = vmatmul.mubr.msk.f32.vlgmr.msra.gmra.mrb[20].mxu0 %vm67_vm0, %v2447_v22  ;;  %v1684_v22 = vld [vmem:[%s2836_s2 + $0x60] sm:$0xff] }
 0x217   :  { %2039 = vmatprep.mubr.msk.f32.mxu0 %vm67_vm0, %v2449_v23  ;;  %v1685_v23 = vld [vmem:[%s2836_s2 + $0x68] sm:$0xff] }
 0x21a   :  { %2040 = vmatmul.mubr.msk.f32.gmra.mrb[22].mxu0 %vm67_vm0, %v2455_v24  ;;  %v2230_v24 = vpack.c.bf16 %v1685_v23, %v1684_v22 }
 0x21b   :  { %2042 = vmatprep.mubr.msk.f32.mxu0 %vm67_vm0, %v2457_v25  ;;  %v1433_v25 = vld [vmem:[%s2838_s4] sm:$0xff] }
 0x21c   :  { %2231 = vmatprep.subr.bf16.mxu1 %v2230_v24 }
 0x21e   :  { %2043 = vmatmul.mubr.msk.f32.gmra.mrb[24].mxu0 %vm67_vm0, %v2463_v26  ;;  %v1434_v26 = vld [vmem:[%s2838_s4 + $0x8] sm:$0xff] }
 0x21f   :  { %2045 = vmatprep.mubr.msk.f32.mxu0 %vm67_vm0, %v2465_v27  ;;  %v2246_v27 = vpack.c.bf16 %v1434_v26, %v1433_v25 }
 0x221   :  { %2247 = vmatprep.subr.bf16.mxu0 %v2246_v27 }
 0x222   :  { %2046 = vmatmul.mubr.msk.f32.gmra.mrb[26].mxu0 %vm67_vm0, %v2471_v28  ;;  %v1686_v28 = vld [vmem:[%s2836_s2 + $0x70] sm:$0xff] }
 0x223   :  { %2048 = vmatprep.mubr.msk.f32.mxu0 %vm67_vm0, %v2473_v29  ;;  %2249 = vmatpush3.bf16.msra.mxu0 %v2246_v27  ;;  %v1687_v29 = vld [vmem:[%s2836_s2 + $0x78] sm:$0xff]  ;;  %v1728_v27 = vld [vmem:[%s2839_s5] ss:$0 sm:$0xff] }
 0x224   :  { %2251 = vmatprep.subr.bf16.mxu0 %v2250_v43 }
 0x226   :  { %2049 = vmatmul.mubr.msk.f32.gmra.mrb[28].mxu0 %vm67_vm0, %v2479_v30 }
 0x227   :  { %2051 = vmatprep.mubr.msk.f32.mxu0 %vm67_vm0, %v2481_v31  ;;  %2253 = vmatpush3.bf16.msra.mxu0 %v2250_v43 }
 0x22a   :  { %2052 = vmatmul.mubr.msk.f32.gmra.mrb[30].mxu0 %vm67_vm0, %v2487_v32  ;;  %v2234_v32 = vpack.c.bf16 %v1687_v29, %v1686_v28 }
 0x22b   :  { %2054 = vmatprep.mubr.msk.f32.mxu0 %vm67_vm0, %v2489_v33  ;;  %v1712_v33 = vld [vmem:[%s2836_s2 + $0xa0] sm:$0xff] }
 0x22e   :  { %2055 = vmatmul.mubr.msk.f32.gmra.mrb[32].mxu0 %vm67_vm0, %v2495_v34  ;;  %v1713_v34 = vld [vmem:[%s2836_s2 + $0xa8] sm:$0xff] }
 0x22f   :  { %2057 = vmatprep.mubr.msk.f32.mxu0 %vm67_vm0, %v2497_v35 }
 0x232   :  { %2058 = vmatmul.mubr.msk.f32.gmra.mrb[34].mxu0 %vm67_vm0, %v2503_v36 }
 0x233   :  { %2060 = vmatprep.mubr.msk.f32.mxu0 %vm67_vm0, %v2505_v37  ;;  %v2238_v37 = vpack.c.bf16 %v1713_v34, %v1712_v33 }
 0x236   :  { %2061 = vmatmul.mubr.msk.f32.gmra.mrb[36].mxu0 %vm67_vm0, %v2511_v38 }
 0x237   :  { %2063 = vmatprep.mubr.msk.f32.mxu0 %vm67_vm0, %v2513_v39 }
 0x23a   :  { %2064 = vmatmul.mubr.msk.f32.gmra.mrb[38].mxu0 %vm67_vm0, %v2519_v40 }
 0x2e9   :  { %v2038_v30 = vpop.f32.mrb[20].mxu0 }
 0x2ea   :  { %v846_v31 = vpop.f32.mrb[21].mxu0 }
 0x2eb   :  { %2074 = vmatprep.mubr.msk.f32.mxu1 %vm302_vm1, %v846_v31 }
 0x2ec   :  { %2075 = vmatmul.mubr.msk.f32.vlgmr.msra.gmra.mrb[10].mxu1 %vm302_vm1, %v2038_v30 }
 0x2ed   :  { %v2041_v35 = vpop.f32.mrb[22].mxu0  ;;  %2233 = vmatpush3.bf16.msra.mxu1 %v2230_v24 }
 0x2ee   :  { %v856_v36 = vpop.f32.mrb[23].mxu0  ;;  %2235 = vmatprep.subr.bf16.mxu1 %v2234_v32 }
 0x2ef   :  { %2077 = vmatprep.mubr.msk.f32.mxu1 %vm302_vm1, %v856_v36 }
 0x2f0   :  { %2078 = vmatmul.mubr.msk.f32.gmra.mrb[12].mxu1 %vm302_vm1, %v2041_v35 }
 0x2f1   :  { %v2044_v38 = vpop.f32.mrb[24].mxu0  ;;  %2237 = vmatpush3.bf16.msra.mxu1 %v2234_v32 }
 0x2f2   :  { %v866_v39 = vpop.f32.mrb[25].mxu0  ;;  %2239 = vmatprep.subr.bf16.mxu1 %v2238_v37 }
 0x2f3   :  { %2080 = vmatprep.mubr.msk.f32.mxu1 %vm302_vm1, %v866_v39 }
 0x2f4   :  { %2081 = vmatmul.mubr.msk.f32.gmra.mrb[14].mxu1 %vm302_vm1, %v2044_v38 }
 0x2f5   :  { %v2047_v40 = vpop.f32.mrb[26].mxu0 }
 0x2f6   :  { %v876_v2 = vpop.f32.mrb[27].mxu0 }
 0x2f7   :  { %2083 = vmatprep.mubr.msk.f32.mxu1 %vm302_vm1, %v876_v2 }
 0x2f8   :  { %2084 = vmatmul.mubr.msk.f32.gmra.mrb[16].mxu1 %vm302_vm1, %v2047_v40 }
 0x2f9   :  { %v2050_v4 = vpop.f32.mrb[28].mxu0 }
 0x2fa   :  { %v886_v12 = vpop.f32.mrb[29].mxu0 }
 0x2fb   :  { %2086 = vmatprep.mubr.msk.f32.mxu1 %vm302_vm1, %v886_v12 }
 0x2fc   :  { %2087 = vmatmul.mubr.msk.f32.gmra.mrb[18].mxu1 %vm302_vm1, %v2050_v4 }
 0x2fd   :  { %2097 = vmatprep.mubr.msk.f32.mxu1 %vm302_vm1, %v770_v21  ;;  %v2053_v10 = vpop.f32.mrb[30].mxu0 }
 0x2fe   :  { %v896_v13 = vpop.f32.mrb[31].mxu0 }
 0x300   :  { %2098 = vmatmul.mubr.msk.f32.vlgmr.msra.gmra.mrb[10].mxu1 %vm302_vm1, %v771_v20 }
 0x301   :  { %2100 = vmatprep.mubr.msk.f32.mxu1 %vm302_vm1, %v772_v47  ;;  %2241 = vmatpush3.bf16.msra.mxu1 %v2238_v37  ;;  %v2056_v14 = vpop.f32.mrb[32].mxu0 }
 0x302   :  { %2243 = vmatprep.subr.bf16.mxu1 %v2242_v11  ;;  %v906_v15 = vpop.f32.mrb[33].mxu0 }
 0x304   :  { %2101 = vmatmul.mubr.msk.f32.gmra.mrb[12].mxu1 %vm302_vm1, %v773_v46 }
 0x305   :  { %2103 = vmatprep.mubr.msk.f32.mxu1 %vm302_vm1, %v774_v54  ;;  %2245 = vmatpush3.bf16.msra.mxu1 %v2242_v11  ;;  %v2059_v16 = vpop.f32.mrb[34].mxu0 }
 0x306   :  { %v916_v17 = vpop.f32.mrb[35].mxu0 }
 0x308   :  { %2104 = vmatmul.mubr.msk.f32.gmra.mrb[14].mxu1 %vm302_vm1, %v775_v53 }
 0x309   :  { %2106 = vmatprep.mubr.msk.f32.mxu1 %vm302_vm1, %v776_v61  ;;  %v2062_v18 = vpop.f32.mrb[36].mxu0 }
 0x30a   :  { %v926_v19 = vpop.f32.mrb[37].mxu0 }
 0x30c   :  { %2107 = vmatmul.mubr.msk.f32.gmra.mrb[16].mxu1 %vm302_vm1, %v777_v60 }
 0x30d   :  { %2109 = vmatprep.mubr.msk.f32.mxu1 %vm302_vm1, %v778_v9  ;;  %v2065_v20 = vpop.f32.mrb[38].mxu0 }
 0x30e   :  { %v936_v21 = vpop.f32.mrb[39].mxu0 }
 0x310   :  { %2110 = vmatmul.mubr.msk.f32.gmra.mrb[18].mxu1 %vm302_vm1, %v779_v0 }
 0x311   :  { %2120 = vmatprep.mubr.msk.f32.mxu1 %vm302_vm1, %v896_v13 }
 0x314   :  { %2121 = vmatmul.mubr.msk.f32.vlgmr.msra.gmra.mrb[10].mxu1 %vm302_vm1, %v2053_v10 }
 0x315   :  { %2123 = vmatprep.mubr.msk.f32.mxu1 %vm302_vm1, %v906_v15 }
 0x318   :  { %2124 = vmatmul.mubr.msk.f32.gmra.mrb[12].mxu1 %vm302_vm1, %v2056_v14 }
 0x319   :  { %2126 = vmatprep.mubr.msk.f32.mxu1 %vm302_vm1, %v916_v17 }
 0x31c   :  { %2127 = vmatmul.mubr.msk.f32.gmra.mrb[14].mxu1 %vm302_vm1, %v2059_v16 }
 0x31d   :  { %2129 = vmatprep.mubr.msk.f32.mxu1 %vm302_vm1, %v926_v19 }
 0x320   :  { %2130 = vmatmul.mubr.msk.f32.gmra.mrb[16].mxu1 %vm302_vm1, %v2062_v18 }
 0x321   :  { %2132 = vmatprep.mubr.msk.f32.mxu1 %vm302_vm1, %v936_v21 }
 0x324   :  { %2133 = vmatmul.mubr.msk.f32.gmra.mrb[18].mxu1 %vm302_vm1, %v2065_v20 }
 0x3e7   :  { %v2122_v45 = vpop.f32.mrb[10].mxu1 }
 0x3e8   :  { %v1414_v46 = vadd.f32 %v2122_v45, %v1727_v44  ;;  %v1346_v47 = vpop.f32.mrb[11].mxu1 }
 0x3e9   :  { %v1413_v48 = vadd.f32 %v1727_v44, %v1346_v47 }
 0x3ea   :  { %v1424_v51 = vmax.f32 %v1414_v46, 0.0 }
 0x3eb   :  { %v1423_v49 = vmax.f32 %v1413_v48, 0.0  ;;  %v2125_v50 = vpop.f32.mrb[12].mxu1 }
 0x3ec   :  { %v1416_v52 = vadd.f32 %v2125_v50, %v1727_v44  ;;  %v1356_v53 = vpop.f32.mrb[13].mxu1 }
 0x3ed   :  { %v1415_v54 = vadd.f32 %v1727_v44, %v1356_v53  ;;  %2143 = vmatprep.mubr.msk.f32.mxu0 %vm302_vm1, %v1423_v49 }
 0x3ee   :  { %2144 = vmatmul.mubr.msk.f32.vlgmr.msra.gmra.mrb[40].mxu0 %vm302_vm1, %v1424_v51  ;;  %v1426_v57 = vmax.f32 %v1416_v52, 0.0 }
 0x3ef   :  { %v1425_v55 = vmax.f32 %v1415_v54, 0.0  ;;  %v2128_v56 = vpop.f32.mrb[14].mxu1 }
 0x3f0   :  { %v1418_v58 = vadd.f32 %v2128_v56, %v1727_v44  ;;  %v1366_v59 = vpop.f32.mrb[15].mxu1 }
 0x3f1   :  { %v1417_v60 = vadd.f32 %v1727_v44, %v1366_v59  ;;  %2146 = vmatprep.mubr.msk.f32.mxu0 %vm302_vm1, %v1425_v55 }
 0x3f2   :  { %2147 = vmatmul.mubr.msk.f32.gmra.mrb[42].mxu0 %vm302_vm1, %v1426_v57  ;;  %v1428_v63 = vmax.f32 %v1418_v58, 0.0 }
 0x3f3   :  { %v1427_v61 = vmax.f32 %v1417_v60, 0.0  ;;  %v2131_v62 = vpop.f32.mrb[16].mxu1 }
 0x3f4   :  { %v1420_v3 = vadd.f32 %v2131_v62, %v1727_v44  ;;  %v1376_v5 = vpop.f32.mrb[17].mxu1 }
 0x3f5   :  { %v1419_v8 = vadd.f32 %v1727_v44, %v1376_v5  ;;  %2149 = vmatprep.mubr.msk.f32.mxu0 %vm302_vm1, %v1427_v61 }
 0x3f6   :  { %2150 = vmatmul.mubr.msk.f32.gmra.mrb[44].mxu0 %vm302_vm1, %v1428_v63  ;;  %v1430_v1 = vmax.f32 %v1420_v3, 0.0 }
 0x3f7   :  { %v1429_v0 = vmax.f32 %v1419_v8, 0.0  ;;  %v2134_v9 = vpop.f32.mrb[18].mxu1 }
 0x3f8   :  { %v1422_v22 = vadd.f32 %v2134_v9, %v1727_v44  ;;  %v1386_v23 = vpop.f32.mrb[19].mxu1 }
 0x3f9   :  { %v1421_v24 = vadd.f32 %v1727_v44, %v1386_v23  ;;  %2152 = vmatprep.mubr.msk.f32.mxu0 %vm302_vm1, %v1429_v0 }
 0x3fa   :  { %2153 = vmatmul.mubr.msk.f32.gmra.mrb[46].mxu0 %vm302_vm1, %v1430_v1  ;;  %v1432_v26 = vmax.f32 %v1422_v22, 0.0 }
 0x3fb   :  { %v1431_v25 = vmax.f32 %v1421_v24, 0.0 }
 0x3fd   :  { %2155 = vmatprep.mubr.msk.f32.mxu0 %vm302_vm1, %v1431_v25 }
 0x3fe   :  { %2156 = vmatmul.mubr.msk.f32.gmra.mrb[48].mxu0 %vm302_vm1, %v1432_v26 }
 0x4c1   :  { %v2145_v28 = vpop.f32.mrb[40].mxu0 }
 0x4c2   :  { %v1546_v29 = vadd.f32 %v2145_v28, %v1728_v27  ;;  %v1540_v30 = vpop.f32.mrb[41].mxu0 }
 0x4c3   :  { %v1541_v31 = vadd.f32 %v1728_v27, %v1540_v30 }
 0x4c4   :  { %1591 = vst.msk [vmem:[%s2840_s6 + $0x8] sm:$0xff] %vm1589_vm2, %v1546_v29 }
 0x4c5   :  { %1590 = vst.msk [vmem:[%s2840_s6] sm:$0xff] %vm1589_vm2, %v1541_v31  ;;  %v2148_v32 = vpop.f32.mrb[42].mxu0 }
 0x4c6   :  { %v1556_v33 = vadd.f32 %v2148_v32, %v1728_v27  ;;  %v1550_v34 = vpop.f32.mrb[43].mxu0 }
 0x4c7   :  { %v1551_v35 = vadd.f32 %v1728_v27, %v1550_v34 }
 0x4c8   :  { %1593 = vst.msk [vmem:[%s2840_s6 + $0x18] sm:$0xff] %vm1589_vm2, %v1556_v33 }
 0x4c9   :  { %1592 = vst.msk [vmem:[%s2840_s6 + $0x10] sm:$0xff] %vm1589_vm2, %v1551_v35  ;;  %v2151_v36 = vpop.f32.mrb[44].mxu0 }
 0x4ca   :  { %v1566_v37 = vadd.f32 %v2151_v36, %v1728_v27  ;;  %v1560_v38 = vpop.f32.mrb[45].mxu0 }
 0x4cb   :  { %v1561_v39 = vadd.f32 %v1728_v27, %v1560_v38 }
 0x4cc   :  { %1595 = vst.msk [vmem:[%s2840_s6 + $0x28] sm:$0xff] %vm1589_vm2, %v1566_v37 }
 0x4cd   :  { %1594 = vst.msk [vmem:[%s2840_s6 + $0x20] sm:$0xff] %vm1589_vm2, %v1561_v39  ;;  %v2154_v40 = vpop.f32.mrb[46].mxu0 }
 0x4ce   :  { %v1576_v2 = vadd.f32 %v2154_v40, %v1728_v27  ;;  %v1570_v4 = vpop.f32.mrb[47].mxu0 }
 0x4cf   :  { %v1571_v12 = vadd.f32 %v1728_v27, %v1570_v4 }
 0x4d0   :  { %1597 = vst.msk [vmem:[%s2840_s6 + $0x38] sm:$0xff] %vm1589_vm2, %v1576_v2 }
 0x4d1   :  { %1596 = vst.msk [vmem:[%s2840_s6 + $0x30] sm:$0xff] %vm1589_vm2, %v1571_v12  ;;  %v2157_v6 = vpop.f32.mrb[48].mxu0 }
 0x4d2   :  { %v1586_v7 = vadd.f32 %v2157_v6, %v1728_v27  ;;  %v1580_v10 = vpop.f32.mrb[49].mxu0 }
 0x4d3   :  { %v1581_v11 = vadd.f32 %v1728_v27, %v1580_v10 }
 0x4d4   :  { %1599 = vst.msk [vmem:[%s2840_s6 + $0x48] sm:$0xff] %vm1589_vm2, %v1586_v7 }
 0x4d5   :  { %1598 = vst.msk [vmem:[%s2840_s6 + $0x40] sm:$0xff] %vm1589_vm2, %v1581_v11 }
 0x4d6   :  { %1604 = vsyncpa [#allocation3], 1 }

</bundles_post_ra>
